<compile_context>
chip_gen: v5e
topology: v5e:2x2
jax: 0.10.0
libtpu: 0.0.40
codegen_flags: <defaults>
</compile_context>

<pallas_src>
import jax
import jax.numpy as jnp
from jax.experimental import pallas as pl
from jax.experimental.pallas import tpu as pltpu


_LANE = 128
_SUBLANE = 8
_TILE_BYTES = 4 * 1024 * 1024        # target bytes per x tile (y tile matches)
_VMEM_LIMIT_BYTES = 32 * 1024 * 1024  # explicit scoped limit; safe on v5e/v6e/v7x


def _round_up(v: int, m: int) -> int:
    return (v + m - 1) // m * m


def linreg_kernel(wb_ref, x_ref, o_ref):
    # wb_ref: (2,) f32 scalars in SMEM -> [weight, bias]; x_ref/o_ref: VMEM tiles.
    w = wb_ref[0]
    b = wb_ref[1]
    o_ref[...] = (x_ref[...].astype(jnp.float32) * w + b).astype(o_ref.dtype)


def linear_regression_forward(x: jax.Array, weights: jax.Array, bias: jax.Array) -> jax.Array:
    """Computes weights * x + bias (scalar broadcast) with a Pallas TPU kernel.

    Works for any input shape / float dtype. The input is viewed as a 2-D
    row-major slab (no padding, no extra HBM copy) and tiled over a 2-D grid.
    """
    orig_shape = x.shape
    dtype = x.dtype

    if x.size == 0:
        return x

    # ---- Collapse to a 2-D row-major slab (free for contiguous arrays). -----
    if x.ndim >= 2:
        C = orig_shape[-1]
        R = x.size // C
    else:
        C = x.size
        R = 1
    x2d = x.reshape(R, C)

    bpe = jnp.dtype(dtype).itemsize

    # ---- Pick tile sizes (multiples of (8, 128) or equal to the full dim). ---
    if C * bpe * _SUBLANE > _TILE_BYTES:
        # Extremely wide rows: tile the lane dim with a 128-multiple chunk.
        tc = max(_LANE, (_TILE_BYTES // (_SUBLANE * bpe)) // _LANE * _LANE)
        tr = _SUBLANE
    else:
        tc = C
        tr = max(_SUBLANE, (_TILE_BYTES // max(C * bpe, 1)) // _SUBLANE * _SUBLANE)

    if tc >= C:
        tc = C                      # full lane extent (legal even if C % 128 != 0)
    if tr >= R:
        tr = R                      # full row extent (legal even if R % 8 != 0)

    # Prefer >=2 row blocks when there's real work so the "parallel" grid axes
    # can shard the stream across v7x's two TensorCores.
    if tr == R and tc == C and R > 2 * _SUBLANE:
        tr = _round_up(pl.cdiv(R, 2), _SUBLANE)

    grid = (pl.cdiv(R, tr), pl.cdiv(C, tc))

    # Packed [w, b] scalars for SMEM.
    wb = jnp.concatenate([weights.reshape(1), bias.reshape(1)]).astype(jnp.float32)

    out2d = pl.pallas_call(
        linreg_kernel,
        out_shape=jax.ShapeDtypeStruct((R, C), dtype),
        grid=grid,
        in_specs=[
            pl.BlockSpec(memory_space=pltpu.SMEM),            # packed [w, b] scalars
            pl.BlockSpec((tr, tc), lambda i, j: (i, j)),      # x tile
        ],
        out_specs=pl.BlockSpec((tr, tc), lambda i, j: (i, j)),
        compiler_params=pltpu.CompilerParams(
            dimension_semantics=("parallel", "parallel"),
            vmem_limit_bytes=_VMEM_LIMIT_BYTES,
        ),
    )(wb, x2d)

    return out2d.reshape(orig_shape)


if __name__ == "__main__":
    key = jax.random.PRNGKey(0)
    kw, kb, kx1, kx2, kx3, kx4 = jax.random.split(key, 6)

    # Deterministic "parameters" matching nn.Parameter(torch.randn(1)) shapes.
    weights = jax.random.normal(kw, (1,), dtype=jnp.float32)
    bias = jax.random.normal(kb, (1,), dtype=jnp.float32)

    # Tile-friendly input.
    x1 = jax.random.normal(kx1, (8, 128), dtype=jnp.float32)
    out1 = jax.block_until_ready(linear_regression_forward(x1, weights, bias))
    ref1 = weights[0] * x1 + bias[0]
    assert out1.shape == x1.shape and out1.dtype == x1.dtype
    assert jnp.allclose(out1, ref1, atol=1e-6, rtol=1e-6)

    # Small, NOT tile-aligned input (full-dim blocks, no padding needed).
    x2 = jax.random.normal(kx2, (3, 50), dtype=jnp.float32)
    out2 = jax.block_until_ready(linear_regression_forward(x2, weights, bias))
    ref2 = weights[0] * x2 + bias[0]
    assert out2.shape == x2.shape and out2.dtype == x2.dtype
    assert jnp.allclose(out2, ref2, atol=1e-6, rtol=1e-6)

    # 3-D input (leading-dim collapse path).
    x3 = jax.random.normal(kx3, (2, 4, 16), dtype=jnp.float32)
    out3 = jax.block_until_ready(linear_regression_forward(x3, weights, bias))
    ref3 = weights[0] * x3 + bias[0]
    assert out3.shape == x3.shape and out3.dtype == x3.dtype
    assert jnp.allclose(out3, ref3, atol=1e-6, rtol=1e-6)

    # Multi-block grid with a masked boundary row-block (40 rows, tr=24).
    x4 = jax.random.normal(kx4, (40, 300), dtype=jnp.float32)
    out4 = jax.block_until_ready(linear_regression_forward(x4, weights, bias))
    ref4 = weights[0] * x4 + bias[0]
    assert out4.shape == x4.shape and out4.dtype == x4.dtype
    assert jnp.allclose(out4, ref4, atol=1e-6, rtol=1e-6)

    print("KERNEL_OK")
</pallas_src>

<mosaic_0001>
module attributes {stable_mosaic.version = 11 : i64} {
  func.func @linreg_kernel(%arg0: i32, %arg1: i32, %arg2: memref<2xf32, #tpu.memory_space<smem>>, %arg3: memref<8x128xf32, #tpu.memory_space<vmem>>, %arg4: memref<8x128xf32, #tpu.memory_space<vmem>>) attributes {dimension_semantics = [#tpu.dimension_semantics<parallel>, #tpu.dimension_semantics<parallel>], iteration_bounds = array<i64: 1, 1>, scalar_prefetch = 0 : i64, scratch_operands = 0 : i64, tpu.core_type = #tpu.core_type<tc>, window_params = [{transform_indices = @transform_0, window_bounds = array<i64: 2>}, {transform_indices = @transform_1, window_bounds = array<i64: 8, 128>}, {transform_indices = @transform_2, window_bounds = array<i64: 8, 128>}]} {
    %c0 = arith.constant 0 : index
    %0 = memref.load %arg2[%c0] : memref<2xf32, #tpu.memory_space<smem>>
    %c1 = arith.constant 1 : index
    %1 = memref.load %arg2[%c1] : memref<2xf32, #tpu.memory_space<smem>>
    %c0_0 = arith.constant 0 : index
    %c0_1 = arith.constant 0 : index
    %2 = vector.load %arg3[%c0_0, %c0_1] : memref<8x128xf32, #tpu.memory_space<vmem>>, vector<8x128xf32>
    %3 = vector.broadcast %0 : f32 to vector<8x128xf32>
    %4 = arith.mulf %2, %3 : vector<8x128xf32>
    %5 = vector.broadcast %1 : f32 to vector<8x128xf32>
    %6 = arith.addf %4, %5 : vector<8x128xf32>
    %c0_2 = arith.constant 0 : index
    %c0_3 = arith.constant 0 : index
    %7 = vector.load %arg4[%c0_2, %c0_3] : memref<8x128xf32, #tpu.memory_space<vmem>>, vector<8x128xf32>
    tpu.vector_store %arg4[%c0_2, %c0_3], %6 {strides = array<i32>} : memref<8x128xf32, #tpu.memory_space<vmem>>, vector<8x128xf32>,
    return
  }
  func.func @transform_0(%arg0: i32, %arg1: i32) -> i32 {
    %c0_i32 = arith.constant 0 : i32
    %c0_i32_0 = arith.constant 0 : i32
    return %c0_i32 : i32
  }
  func.func @transform_1(%arg0: i32, %arg1: i32) -> (i32, i32) {
    %c0_i32 = arith.constant 0 : i32
    return %arg0, %arg1 : i32, i32
  }
  func.func @transform_2(%arg0: i32, %arg1: i32) -> (i32, i32) {
    %c0_i32 = arith.constant 0 : i32
    return %arg0, %arg1 : i32, i32
  }
}

</mosaic_0001>

<bundles_post_ra>
// kernel: tpu_custom_call.1
= control target key start
LH: loop header
LB: loop body
LE: loop exit
PB: predicated region body
PF: predicated region fallthrough
CT: control target
= control target key end

     0   :  { %7 = vsyncpa [#allocation5], 0  ;;  %s162_s0 = inlined_call_operand.hbm [shape: f32[2], index: 0, kind: input, shape index: {}]   ;;  %s163_s1 = inlined_call_operand.hbm [shape: f32[8,128], index: 1, kind: input, shape index: {}]   ;;  %s164_s2 = inlined_call_operand.hbm [shape: f32[8,128], index: 2, kind: output, shape index: {}]  }
   0x1   :  { %8 = vsyncpa [#allocation3], 0 }
   0x2   :  { %9 = vsyncpa [#allocation4], 0  ;;  %s15_s11 = sshll.u32 %s162_s0, 4  ;;  %s24_s14 = sshll.u32 %s163_s1, 4  ;;  %s16_s11 = int_to_ptr.hbm [resolvable:$true] %s15_s11  ;;  %s25_s14 = int_to_ptr.hbm [resolvable:$true] %s24_s14 }
   0x3   :  { %s135_s15 = smov [#allocation2]   ;;  %s136_s16 = smov [#allocation6]  }
   0x4   :  { %18 = dma.hbm_to_smem %s16_s11, 16, %s135_s15, [#allocation5]  }
   0x5   :  { %s26_s17 = sshll.u32 %s136_s16, 4  ;;  %s27_s17 = int_to_ptr.vmem [resolvable:$true] %s26_s17 }
   0x6   :  { %29 = dma.hbm_to_vmem [thread:$0]  %s25_s14, 128, %s27_s17, [#allocation3]  }
   0x7   :  { %129 = dma.done.wait [#allocation5], 16  }
   0x8   :  { %130 = vsyncadd [#allocation5], 4294967280 }
   0x9   :  { %131 = dma.done.wait [#allocation3], 128  }
   0xa   :  { %132 = vsyncadd [#allocation3], 4294967168 }
   0xb   :  { %38 = sfence }
   0xc   :  { %s39_s18 = sld [smem:[#allocation2]]  ;;  %v41_v0 = vld [vmem:[#allocation6] sm:$0xff]  ;;  %s137_s0 = smov [#allocation7]  }
   0xd   :  { %s65_s19 = sld [smem:[#allocation2 + $0x1]]  ;;  %s52_s20 = sshll.u32 %s137_s0, 4  ;;  %s53_s20 = int_to_ptr.vmem [resolvable:$true] %s52_s20 }
   0xe   :  { %s54_s22 = sshll.u32 %s164_s2, 4  ;;  %s55_s22 = int_to_ptr.hbm [resolvable:$true] %s54_s22 }
  0x12   :  { %v42_v1 = vstv %s39_s18 }
  0x13   :  { %v43_v2 = vmul.f32 %v42_v1, %v41_v0  ;;  %v44_v3 = vstv %s65_s19 }
  0x15   :  { %v45_v4 = vadd.f32 %v44_v3, %v43_v2 }
  0x17   :  { %46 = vst [vmem:[#allocation7] sm:$0xff] %v45_v4 }
  0x18   :  { %57 = dma.vmem_to_hbm [thread:$0]  %s53_s20, 128, %s55_s22, [#allocation4]  }
  0x19   :  { %133 = dma.done.wait [#allocation4], 128  }
  0x1a   :  { %134 = vsyncadd [#allocation4], 4294967168 }
  0x1b   :  { %62 = vsyncpa [#allocation3], 1 }
  0x1c   :  { %63 = vsyncpa [#allocation4], 1 }
  0x1d   :  { %64 = vsyncpa [#allocation5], 1 }

</bundles_post_ra>
